<compile_context>
chip_gen: v6e
topology: v6e:2x2x1
jax: 0.10.0
libtpu: 0.0.40
codegen_flags: <defaults>
</compile_context>

<pallas_src>
import functools

import numpy as np
import jax
import jax.numpy as jnp
from jax.experimental import pallas as pl
from jax.experimental.pallas import tpu as pltpu


_LANES = 128
_SUBLANES = 8
_ALIGN = _LANES * _SUBLANES          # 1024 elements = one (8, 128) f32 tile

_LOG_LO = float(np.log(1e-4))        # log of the torch _sigmoid lower clamp
_LOG_HI = float(np.log1p(-1e-4))     # log of the torch _sigmoid upper clamp
_GT_PAD = 2.0                        # gt sentinel: neither pos (gt==1) nor neg (gt<1)


def _round_up(x, m):
    return ((x + m - 1) // m) * m


# ----------------------------------------------------------------------------
# Kernel 1: CenterNet focal loss partial sums (tiled, pipelined, megacore-friendly)
#   pred is the *logit*; _sigmoid (sigmoid + clamp to [1e-4, 1-1e-4]) is fused here
#   via the monotone clamp in log space.  Each tile writes its own (3, 8, 128)
#   lane-dense partial-sum slot; the final reduction happens in JAX.
#   No validity mask: the host pads every map to whole tiles with gt == _GT_PAD.
# ----------------------------------------------------------------------------
def _focal_tile_kernel(tile_r, logit_ref, gt_ref, out_ref):
    x = logit_ref[...].astype(jnp.float32)
    gt = gt_ref[...].astype(jnp.float32)

    # Stable softplus(-x) = max(-x, 0) + log(1 + exp(-|x|)):  1 exp + 1 log (EUP).
    e = jnp.exp(-jnp.abs(x))
    sp_neg = jnp.maximum(-x, 0.0) + jnp.log(1.0 + e)
    # log(clamp(sigmoid(x))) / log(1 - clamp(sigmoid(x))) via the clamp in log space.
    log_p = jnp.clip(-sp_neg, _LOG_LO, _LOG_HI)
    log_1mp = jnp.clip(-(x + sp_neg), _LOG_LO, _LOG_HI)
    # clamp(sigmoid(x)) and its complement recovered on the EUP (slack slot) — no
    # VALU reciprocal / sign-select / extra clamp needed.
    pred = jnp.exp(log_p)            # == clamp(sigmoid(x), 1e-4, 1-1e-4)
    omp = jnp.exp(log_1mp)           # == 1 - clamp(sigmoid(x), 1e-4, 1-1e-4)

    pos = gt == 1.0
    neg = gt < 1.0                   # padding sentinel 2.0 hits neither branch
    t = (1.0 - gt) * (1.0 - gt)
    neg_w = t * t                    # (1 - gt)^4 via two squarings

    pos_term = jnp.where(pos, log_p * omp * omp, 0.0)
    neg_term = jnp.where(neg, log_1mp * pred * pred * neg_w, 0.0)
    pos_cnt = jnp.where(pos, 1.0, 0.0)

    def fold(a):  # (tile_r, 128) -> (8, 128) lane-preserving partial reduction
        return a.reshape(tile_r // _SUBLANES, _SUBLANES, _LANES).sum(axis=0)

    out_ref[0, 0] = fold(pos_term)
    out_ref[0, 1] = fold(neg_term)
    out_ref[0, 2] = fold(pos_cnt)


def focal_loss_multi(pairs, tile_rows=1024):
    """Fused FocalLoss(_sigmoid(logits), gt) for several heatmaps in ONE pallas_call.

    pairs: list of (logits, gt) arrays (any shape). Returns one scalar loss per pair.
    """
    nmaps = len(pairs)
    raw_rows = []
    for logits, _ in pairs:
        total = int(np.prod(logits.shape))
        raw_rows.append(max(1, -(-total // _LANES)))
    max_rows = max(raw_rows)

    tile_r = min(int(tile_rows), _round_up(max_rows, _SUBLANES))
    if nmaps == 1:
        # Keep at least 2 tiles so both v7x TensorCores get work; with the fused
        # hm + hm_hp call (nmaps >= 2) this is automatic.
        tile_r = min(tile_r, _round_up(-(-max_rows // 2), _SUBLANES))
    tile_r = max(tile_r, _SUBLANES)

    p_rows, g_rows, tiles_per = [], [], []
    for (logits, gt), rr in zip(pairs, raw_rows):
        total = int(np.prod(logits.shape))
        padded_rows = _round_up(rr, tile_r)
        pad = padded_rows * _LANES - total
        pf = logits.reshape(-1).astype(jnp.float32)
        gf = gt.reshape(-1).astype(jnp.float32)
        if pad:
            pf = jnp.pad(pf, (0, pad))
            gf = jnp.pad(gf, (0, pad), constant_values=_GT_PAD)
        p_rows.append(pf.reshape(padded_rows, _LANES))
        g_rows.append(gf.reshape(padded_rows, _LANES))
        tiles_per.append(padded_rows // tile_r)

    p_all = p_rows[0] if nmaps == 1 else jnp.concatenate(p_rows, axis=0)
    g_all = g_rows[0] if nmaps == 1 else jnp.concatenate(g_rows, axis=0)
    n_tiles = int(sum(tiles_per))

    partials = pl.pallas_call(
        functools.partial(_focal_tile_kernel, tile_r),
        out_shape=jax.ShapeDtypeStruct((n_tiles, 3, _SUBLANES, _LANES), jnp.float32),
        grid=(n_tiles,),
        in_specs=[pl.BlockSpec((tile_r, _LANES), lambda i: (i, 0)),
                  pl.BlockSpec((tile_r, _LANES), lambda i: (i, 0))],
        out_specs=pl.BlockSpec((1, 3, _SUBLANES, _LANES), lambda i: (i, 0, 0, 0)),
        compiler_params=pltpu.CompilerParams(dimension_semantics=("parallel",)),
    )(p_all, g_all)

    losses, off = [], 0
    for nt in tiles_per:
        sums = partials[off:off + nt].sum(axis=(0, 2, 3))
        off += nt
        pos_loss, neg_loss, num_pos = sums[0], sums[1], sums[2]
        losses.append(jnp.where(num_pos == 0.0, -neg_loss,
                                -(pos_loss + neg_loss) / num_pos))
    return losses


# ----------------------------------------------------------------------------
# Kernel 2: fused masked-L1 partial sums for all regression heads in one launch.
#   Inputs are the already-gathered (B*K, C) slabs of every head, flattened,
#   padded to a multiple of 8 rows (mask padded with 0 -> contributes nothing)
#   and row-concatenated.  Head boundaries are STATIC python row slices, so there
#   is one vectorized pass over the data and two cross-lane reduces per head.
# ----------------------------------------------------------------------------
def _fused_l1_kernel(row_bounds, p_ref, m_ref, t_ref, out_ref):
    p = p_ref[...].astype(jnp.float32)
    m = m_ref[...].astype(jnp.float32)
    t = t_ref[...].astype(jnp.float32)
    diff = jnp.abs(p * m - t * m)        # torch-faithful (exact for soft masks too)
    for h, (r0, r1) in enumerate(row_bounds):   # static, 8-row-aligned slices
        out_ref[2 * h] = jnp.sum(diff[r0:r1, :])
        out_ref[2 * h + 1] = jnp.sum(m[r0:r1, :])


def fused_masked_l1(heads):
    """heads: list of (pred_bkc, mask_bkc, target_bkc). Returns (l1_sums, mask_sums)."""
    nheads = len(heads)
    ps, ms, ts, bounds = [], [], [], []
    row = 0
    for (p, m, t) in heads:
        n = int(np.prod(p.shape))
        pad = (-n) % _ALIGN
        pf = p.reshape(-1).astype(jnp.float32)
        mf = m.reshape(-1).astype(jnp.float32)
        tf = t.reshape(-1).astype(jnp.float32)
        if pad:
            pf = jnp.pad(pf, (0, pad))
            mf = jnp.pad(mf, (0, pad))          # padded mask = 0 -> no contribution
            tf = jnp.pad(tf, (0, pad))
        rows_h = (n + pad) // _LANES            # multiple of 8
        ps.append(pf.reshape(rows_h, _LANES))
        ms.append(mf.reshape(rows_h, _LANES))
        ts.append(tf.reshape(rows_h, _LANES))
        bounds.append((row, row + rows_h))
        row += rows_h

    def cat(xs):
        return xs[0] if len(xs) == 1 else jnp.concatenate(xs, axis=0)

    out = pl.pallas_call(
        functools.partial(_fused_l1_kernel, tuple(bounds)),
        out_shape=jax.ShapeDtypeStruct((2 * nheads,), jnp.float32),
        in_specs=[pl.BlockSpec(memory_space=pltpu.MemorySpace.VMEM)] * 3,
        out_specs=pl.BlockSpec(memory_space=pltpu.MemorySpace.SMEM),
    )(cat(ps), cat(ms), cat(ts))
    return out[0::2], out[1::2]


def _gather_feat(feat_nchw, ind_bk):
    """_tranpose_and_gather_feat: out[b,k,c] = feat[b,c,ind[b,k]].

    Reads only B*K*C elements (XLA gather on a free (B, C, H*W) view); no full-map
    transpose or full-slab VMEM residency.
    """
    B, C, H, W = feat_nchw.shape
    feat = feat_nchw.reshape(B, C, H * W)
    idx = ind_bk.astype(jnp.int32)[:, None, :]               # (B, 1, K)
    g = jnp.take_along_axis(feat, idx, axis=2)                # (B, C, K)
    return jnp.transpose(g, (0, 2, 1))                        # (B, K, C) — tiny


# ----------------------------------------------------------------------------
# MultiPoseLoss forward
# ----------------------------------------------------------------------------
DEFAULT_OPT = dict(
    num_stacks=1, mdn=False, dense_hp=False, reg_loss='l1',
    hm_hp=True, reg_offset=True, reg_hp_offset=True,
    hm_weight=1.0, wh_weight=0.1, off_weight=1.0, hp_weight=1.0, hm_hp_weight=1.0,
)


def multi_pose_loss(outputs, batch, opt=DEFAULT_OPT):
    ns = opt['num_stacks']
    hm_loss = wh_loss = off_loss = 0.0
    hp_loss = hm_hp_loss = hp_offset_loss = 0.0

    use_hmhp = opt['hm_hp'] and opt['hm_hp_weight'] > 0
    use_wh = opt['wh_weight'] > 0
    use_off = opt['reg_offset'] and opt['off_weight'] > 0
    use_hp_off = opt['reg_hp_offset'] and opt['off_weight'] > 0

    for s in range(ns):
        out = outputs[s]

        # Focal heads (hm + hm_hp) share one fused Pallas launch per stack.
        pairs = [(out['hm'], batch['hm'])]
        if use_hmhp:
            pairs.append((out['hm_hp'], batch['hm_hp']))
        fls = focal_loss_multi(pairs)
        hm_loss = hm_loss + fls[0] / ns
        if use_hmhp:
            hm_hp_loss = hm_hp_loss + fls[1] / ns

        # One gather for all heads indexed by batch['ind'] (hps / wh / reg).
        feats, chans = [out['hps']], [out['hps'].shape[1]]
        if use_wh:
            feats.append(out['wh']); chans.append(out['wh'].shape[1])
        if use_off:
            feats.append(out['reg']); chans.append(out['reg'].shape[1])
        cat_feat = feats[0] if len(feats) == 1 else jnp.concatenate(feats, axis=1)
        gathered = _gather_feat(cat_feat, batch['ind'])       # (B, K, sum(chans))
        splits = np.cumsum(chans)[:-1].tolist()
        parts = jnp.split(gathered, splits, axis=2) if splits else [gathered]

        # All small regression heads share one fused Pallas reduction call.
        head_names = ['hp']
        heads = [(parts[0], batch['hps_mask'].astype(jnp.float32), batch['hps'])]
        pi = 1
        if use_wh:
            mk = jnp.broadcast_to(batch['reg_mask'][..., None].astype(jnp.float32),
                                  batch['wh'].shape)
            head_names.append('wh'); heads.append((parts[pi], mk, batch['wh'])); pi += 1
        if use_off:
            mk = jnp.broadcast_to(batch['reg_mask'][..., None].astype(jnp.float32),
                                  batch['reg'].shape)
            head_names.append('off'); heads.append((parts[pi], mk, batch['reg'])); pi += 1
        if use_hp_off:
            hp_off_pred = _gather_feat(out['hp_offset'], batch['hp_ind'])
            mk = jnp.broadcast_to(batch['hp_mask'][..., None].astype(jnp.float32),
                                  batch['hp_offset'].shape)
            head_names.append('hp_off'); heads.append((hp_off_pred, mk, batch['hp_offset']))

        l1s, msums = fused_masked_l1(heads)
        per_head = {name: l1s[i] / (msums[i] + 1e-4) for i, name in enumerate(head_names)}

        hp_loss = hp_loss + per_head['hp'] / ns
        if use_wh:
            wh_loss = wh_loss + per_head['wh'] / ns
        if use_off:
            off_loss = off_loss + per_head['off'] / ns
        if use_hp_off:
            hp_offset_loss = hp_offset_loss + per_head['hp_off'] / ns

    loss = (opt['hm_weight'] * hm_loss + opt['wh_weight'] * wh_loss
            + opt['off_weight'] * off_loss + opt['hp_weight'] * hp_loss
            + opt['hm_hp_weight'] * hm_hp_loss + opt['off_weight'] * hp_offset_loss)
    loss_stats = {
        'loss': loss, 'hm_loss': hm_loss, 'hp_loss': hp_loss,
        'hm_hp_loss': hm_hp_loss, 'hp_offset_loss': hp_offset_loss,
        'wh_loss': wh_loss, 'off_loss': off_loss,
    }
    return loss, loss_stats


# ----------------------------------------------------------------------------
# Pure-JAX reference (mirrors the PyTorch math) for a correctness check.
# ----------------------------------------------------------------------------
def _focal_ref(logits, gt):
    pred = jnp.clip(jax.nn.sigmoid(logits), 1e-4, 1.0 - 1e-4)
    pos = (gt == 1.0).astype(jnp.float32)
    neg = (gt < 1.0).astype(jnp.float32)
    nw = (1.0 - gt) ** 4
    pl_ = jnp.sum(jnp.log(pred) * (1.0 - pred) ** 2 * pos)
    nl = jnp.sum(jnp.log(1.0 - pred) * pred ** 2 * nw * neg)
    npos = jnp.sum(pos)
    return jnp.where(npos == 0.0, -nl, -(pl_ + nl) / npos)


def _gather_ref(feat_nchw, ind_bk):
    B, C, H, W = feat_nchw.shape
    f = jnp.transpose(feat_nchw, (0, 2, 3, 1)).reshape(B, H * W, C)
    return jnp.take_along_axis(f, ind_bk[:, :, None].astype(jnp.int32), axis=1)


def _loss_ref(outputs, batch, opt=DEFAULT_OPT):
    out = outputs[0]
    hm_loss = _focal_ref(out['hm'], batch['hm'])
    hm_hp_loss = _focal_ref(out['hm_hp'], batch['hm_hp'])

    def wl1(o, m, ind, t):
        p = _gather_ref(o, ind)
        return jnp.sum(jnp.abs(p * m - t * m)) / (jnp.sum(m) + 1e-4)

    hp_loss = wl1(out['hps'], batch['hps_mask'], batch['ind'], batch['hps'])
    mk = jnp.broadcast_to(batch['reg_mask'][:, :, None], batch['wh'].shape)
    wh_loss = wl1(out['wh'], mk, batch['ind'], batch['wh'])
    off_loss = wl1(out['reg'], mk, batch['ind'], batch['reg'])
    hmk = jnp.broadcast_to(batch['hp_mask'][:, :, None], batch['hp_offset'].shape)
    hp_off_loss = wl1(out['hp_offset'], hmk, batch['hp_ind'], batch['hp_offset'])

    return (opt['hm_weight'] * hm_loss + opt['wh_weight'] * wh_loss
            + opt['off_weight'] * off_loss + opt['hp_weight'] * hp_loss
            + opt['hm_hp_weight'] * hm_hp_loss + opt['off_weight'] * hp_off_loss)


# ----------------------------------------------------------------------------
if __name__ == "__main__":
    key = jax.random.PRNGKey(0)
    ks = jax.random.split(key, 20)

    B, H, W = 2, 16, 16
    C_HM = 4          # object classes
    J = 4             # keypoints  -> hps has 2*J channels, hm_hp has J channels
    K = 8             # max objects
    K_HP = 16         # max keypoint slots

    # Network head outputs (synthetic, deterministic) — NCHW like PyTorch.
    outputs = [{
        'hm':        jax.random.normal(ks[0], (B, C_HM, H, W), jnp.float32),
        'hm_hp':     jax.random.normal(ks[1], (B, J, H, W), jnp.float32),
        'hps':       jax.random.normal(ks[2], (B, 2 * J, H, W), jnp.float32),
        'wh':        jax.random.normal(ks[3], (B, 2, H, W), jnp.float32),
        'reg':       jax.random.normal(ks[4], (B, 2, H, W), jnp.float32),
        'hp_offset': jax.random.normal(ks[5], (B, 2, H, W), jnp.float32),
    }]

    # Ground-truth batch.
    u_hm = jax.random.uniform(ks[6], (B, C_HM, H, W), jnp.float32)
    hm_gt = jnp.where(u_hm > 0.97, 1.0, u_hm * 0.9)        # a few exact-1 peaks
    u_hp = jax.random.uniform(ks[7], (B, J, H, W), jnp.float32)
    hm_hp_gt = jnp.where(u_hp > 0.97, 1.0, u_hp * 0.9)

    batch = {
        'hm': hm_gt,
        'hm_hp': hm_hp_gt,
        'ind': jax.random.randint(ks[8], (B, K), 0, H * W, jnp.int32),
        'hps': jax.random.normal(ks[9], (B, K, 2 * J), jnp.float32),
        'hps_mask': jax.random.bernoulli(ks[10], 0.7, (B, K, 2 * J)).astype(jnp.float32),
        'reg_mask': jax.random.bernoulli(ks[11], 0.8, (B, K)).astype(jnp.float32),
        'wh': jax.random.uniform(ks[12], (B, K, 2), jnp.float32) * 4.0,
        'reg': jax.random.uniform(ks[13], (B, K, 2), jnp.float32),
        'hp_ind': jax.random.randint(ks[14], (B, K_HP), 0, H * W, jnp.int32),
        'hp_mask': jax.random.bernoulli(ks[15], 0.7, (B, K_HP)).astype(jnp.float32),
        'hp_offset': jax.random.uniform(ks[16], (B, K_HP, 2), jnp.float32),
    }

    loss, stats = multi_pose_loss(outputs, batch)
    loss = jax.block_until_ready(loss)

    ref = jax.block_until_ready(_loss_ref(outputs, batch))
    assert np.allclose(np.asarray(loss), np.asarray(ref), rtol=1e-3, atol=1e-3), (
        f"mismatch: pallas={float(loss)} ref={float(ref)}")

    print("KERNEL_OK")
</pallas_src>

<mosaic_0001>
module attributes {stable_mosaic.version = 11 : i64} {
  func.func @_focal_tile_kernel(%arg0: i32, %arg1: memref<16x128xf32, #tpu.memory_space<vmem>>, %arg2: memref<16x128xf32, #tpu.memory_space<vmem>>, %arg3: memref<1x3x8x128xf32, #tpu.memory_space<vmem>>) attributes {dimension_semantics = [#tpu.dimension_semantics<parallel>], iteration_bounds = array<i64: 2>, scalar_prefetch = 0 : i64, scratch_operands = 0 : i64, tpu.core_type = #tpu.core_type<tc>, window_params = [{transform_indices = @transform_0, window_bounds = array<i64: 16, 128>}, {transform_indices = @transform_1, window_bounds = array<i64: 16, 128>}, {transform_indices = @transform_2, window_bounds = array<i64: 1, 3, 8, 128>}]} {
    %c0 = arith.constant 0 : index
    %c0_0 = arith.constant 0 : index
    %0 = vector.load %arg1[%c0, %c0_0] : memref<16x128xf32, #tpu.memory_space<vmem>>, vector<16x128xf32>
    %c0_1 = arith.constant 0 : index
    %c0_2 = arith.constant 0 : index
    %1 = vector.load %arg2[%c0_1, %c0_2] : memref<16x128xf32, #tpu.memory_space<vmem>>, vector<16x128xf32>
    %2 = math.absf %0 : vector<16x128xf32>
    %cst = arith.constant 0.000000e+00 : f32
    %3 = vector.broadcast %cst : f32 to vector<16x128xf32>
    %4 = arith.subf %3, %2 : vector<16x128xf32>
    %5 = math.exp %4 : vector<16x128xf32>
    %cst_3 = arith.constant 0.000000e+00 : f32
    %6 = vector.broadcast %cst_3 : f32 to vector<16x128xf32>
    %7 = arith.subf %6, %0 : vector<16x128xf32>
    %cst_4 = arith.constant 0.000000e+00 : f32
    %8 = vector.broadcast %cst_4 : f32 to vector<16x128xf32>
    %9 = arith.maximumf %7, %8 : vector<16x128xf32>
    %cst_5 = arith.constant 1.000000e+00 : f32
    %10 = vector.broadcast %cst_5 : f32 to vector<16x128xf32>
    %11 = arith.addf %10, %5 : vector<16x128xf32>
    %12 = math.log %11 : vector<16x128xf32>
    %13 = arith.addf %9, %12 : vector<16x128xf32>
    %cst_6 = arith.constant 0.000000e+00 : f32
    %14 = vector.broadcast %cst_6 : f32 to vector<16x128xf32>
    %15 = arith.subf %14, %13 : vector<16x128xf32>
    %cst_7 = arith.constant -9.21034049 : f32
    %cst_8 = arith.constant -1.000050e-04 : f32
    %16 = vector.broadcast %cst_7 : f32 to vector<16x128xf32>
    %17 = arith.maximumf %16, %15 : vector<16x128xf32>
    %18 = vector.broadcast %cst_8 : f32 to vector<16x128xf32>
    %19 = arith.minimumf %18, %17 : vector<16x128xf32>
    %20 = arith.addf %0, %13 : vector<16x128xf32>
    %cst_9 = arith.constant 0.000000e+00 : f32
    %21 = vector.broadcast %cst_9 : f32 to vector<16x128xf32>
    %22 = arith.subf %21, %20 : vector<16x128xf32>
    %cst_10 = arith.constant -9.21034049 : f32
    %cst_11 = arith.constant -1.000050e-04 : f32
    %23 = vector.broadcast %cst_10 : f32 to vector<16x128xf32>
    %24 = arith.maximumf %23, %22 : vector<16x128xf32>
    %25 = vector.broadcast %cst_11 : f32 to vector<16x128xf32>
    %26 = arith.minimumf %25, %24 : vector<16x128xf32>
    %27 = math.exp %19 : vector<16x128xf32>
    %28 = math.exp %26 : vector<16x128xf32>
    %cst_12 = arith.constant 1.000000e+00 : f32
    %29 = vector.broadcast %cst_12 : f32 to vector<16x128xf32>
    %30 = arith.cmpf oeq, %1, %29 : vector<16x128xf32>
    %cst_13 = arith.constant 1.000000e+00 : f32
    %31 = vector.broadcast %cst_13 : f32 to vector<16x128xf32>
    %32 = arith.cmpf olt, %1, %31 : vector<16x128xf32>
    %cst_14 = arith.constant 1.000000e+00 : f32
    %33 = vector.broadcast %cst_14 : f32 to vector<16x128xf32>
    %34 = arith.subf %33, %1 : vector<16x128xf32>
    %cst_15 = arith.constant 1.000000e+00 : f32
    %35 = vector.broadcast %cst_15 : f32 to vector<16x128xf32>
    %36 = arith.subf %35, %1 : vector<16x128xf32>
    %37 = arith.mulf %34, %36 : vector<16x128xf32>
    %38 = arith.mulf %37, %37 : vector<16x128xf32>
    %39 = arith.mulf %19, %28 : vector<16x128xf32>
    %40 = arith.mulf %39, %28 : vector<16x128xf32>
    %cst_16 = arith.constant 0.000000e+00 : f32
    %41 = vector.broadcast %cst_16 : f32 to vector<16x128xf32>
    %42 = arith.select %30, %40, %41 : vector<16x128xi1>, vector<16x128xf32>
    %43 = arith.mulf %26, %27 : vector<16x128xf32>
    %44 = arith.mulf %43, %27 : vector<16x128xf32>
    %45 = arith.mulf %44, %38 : vector<16x128xf32>
    %cst_17 = arith.constant 0.000000e+00 : f32
    %46 = vector.broadcast %cst_17 : f32 to vector<16x128xf32>
    %47 = arith.select %32, %45, %46 : vector<16x128xi1>, vector<16x128xf32>
    %cst_18 = arith.constant 1.000000e+00 : f32
    %cst_19 = arith.constant 0.000000e+00 : f32
    %48 = vector.broadcast %cst_18 : f32 to vector<16x128xf32>
    %49 = vector.broadcast %cst_19 : f32 to vector<16x128xf32>
    %50 = arith.select %30, %48, %49 : vector<16x128xi1>, vector<16x128xf32>
    %51 = vector.shape_cast %42 : vector<16x128xf32> to vector<2x8x128xf32>
    %cst_20 = arith.constant dense<0.000000e+00> : vector<8x128xf32>
    %52 = vector.multi_reduction <add>, %51, %cst_20 [0] : vector<2x8x128xf32> to vector<8x128xf32>
    %c0_21 = arith.constant 0 : index
    %c0_22 = arith.constant 0 : index
    %c0_23 = arith.constant 0 : index
    %c0_24 = arith.constant 0 : index
    %53 = vector.load %arg3[%c0_21, %c0_22, %c0_23, %c0_24] : memref<1x3x8x128xf32, #tpu.memory_space<vmem>>, vector<1x1x8x128xf32>
    %54 = vector.shape_cast %53 : vector<1x1x8x128xf32> to vector<8x128xf32>
    %55 = vector.shape_cast %52 : vector<8x128xf32> to vector<1x1x8x128xf32>
    tpu.vector_store %arg3[%c0_21, %c0_22, %c0_23, %c0_24], %55 {strides = array<i32>} : memref<1x3x8x128xf32, #tpu.memory_space<vmem>>, vector<1x1x8x128xf32>,
    %56 = vector.shape_cast %47 : vector<16x128xf32> to vector<2x8x128xf32>
    %cst_25 = arith.constant dense<0.000000e+00> : vector<8x128xf32>
    %57 = vector.multi_reduction <add>, %56, %cst_25 [0] : vector<2x8x128xf32> to vector<8x128xf32>
    %c0_26 = arith.constant 0 : index
    %c1 = arith.constant 1 : index
    %c0_27 = arith.constant 0 : index
    %c0_28 = arith.constant 0 : index
    %58 = vector.load %arg3[%c0_26, %c1, %c0_27, %c0_28] : memref<1x3x8x128xf32, #tpu.memory_space<vmem>>, vector<1x1x8x128xf32>
    %59 = vector.shape_cast %58 : vector<1x1x8x128xf32> to vector<8x128xf32>
    %60 = vector.shape_cast %57 : vector<8x128xf32> to vector<1x1x8x128xf32>
    tpu.vector_store %arg3[%c0_26, %c1, %c0_27, %c0_28], %60 {strides = array<i32>} : memref<1x3x8x128xf32, #tpu.memory_space<vmem>>, vector<1x1x8x128xf32>,
    %61 = vector.shape_cast %50 : vector<16x128xf32> to vector<2x8x128xf32>
    %cst_29 = arith.constant dense<0.000000e+00> : vector<8x128xf32>
    %62 = vector.multi_reduction <add>, %61, %cst_29 [0] : vector<2x8x128xf32> to vector<8x128xf32>
    %c0_30 = arith.constant 0 : index
    %c2 = arith.constant 2 : index
    %c0_31 = arith.constant 0 : index
    %c0_32 = arith.constant 0 : index
    %63 = vector.load %arg3[%c0_30, %c2, %c0_31, %c0_32] : memref<1x3x8x128xf32, #tpu.memory_space<vmem>>, vector<1x1x8x128xf32>
    %64 = vector.shape_cast %63 : vector<1x1x8x128xf32> to vector<8x128xf32>
    %65 = vector.shape_cast %62 : vector<8x128xf32> to vector<1x1x8x128xf32>
    tpu.vector_store %arg3[%c0_30, %c2, %c0_31, %c0_32], %65 {strides = array<i32>} : memref<1x3x8x128xf32, #tpu.memory_space<vmem>>, vector<1x1x8x128xf32>,
    return
  }
  func.func @transform_0(%arg0: i32) -> (i32, i32) {
    %c0_i32 = arith.constant 0 : i32
    %c0_i32_0 = arith.constant 0 : i32
    return %arg0, %c0_i32 : i32, i32
  }
  func.func @transform_1(%arg0: i32) -> (i32, i32) {
    %c0_i32 = arith.constant 0 : i32
    %c0_i32_0 = arith.constant 0 : i32
    return %arg0, %c0_i32 : i32, i32
  }
  func.func @transform_2(%arg0: i32) -> (i32, i32, i32, i32) {
    %c0_i32 = arith.constant 0 : i32
    %c0_i32_0 = arith.constant 0 : i32
    %c0_i32_1 = arith.constant 0 : i32
    %c0_i32_2 = arith.constant 0 : i32
    return %arg0, %c0_i32, %c0_i32_0, %c0_i32_1 : i32, i32, i32, i32
  }
}

</mosaic_0001>

<bundles_post_ra>
// kernel: tpu_custom_call.1
= control target key start
LH: loop header
LB: loop body
LE: loop exit
PB: predicated region body
PF: predicated region fallthrough
CT: control target
= control target key end

     0   :  { %7 = vsyncpa [#allocation3], 0  ;;  %s879_s0 = inlined_call_operand.hbm [shape: f32[32,128], index: 0, kind: input, shape index: {}]   ;;  %s880_s1 = inlined_call_operand.hbm [shape: f32[32,128], index: 1, kind: input, shape index: {}]   ;;  %s881_s2 = inlined_call_operand.hbm [shape: f32[2,3,8,128], index: 2, kind: output, shape index: {}]  }
   0x1   :  { %9 = vsyncpa [#allocation3 + $0x1], 0 }
   0x2   :  { %10 = vsyncpa [#allocation6], 0 }
   0x3   :  { %12 = vsyncpa [#allocation6 + $0x1], 0 }
   0x4   :  { %13 = vsyncpa [#allocation4], 0 }
   0x5   :  { %15 = vsyncpa [#allocation4 + $0x1], 0  ;;  %s636_s9 = smov 0   ;;  %s638_s10 = smov 0  }
   0x6   :  { %s640_s11 = smov 0   ;;  %s642_s12 = smov 0  }
   0x7 LB: > { %s657_s13 = sadd.s32 4294967295, %s611_s12   ;;  %s394_s14 = sadd.s32 4294967294, %s611_s12   ;;  %s611_s12 = sphi %s642_s12, %s897_s12   ;;  %s607_s11 = sphi %s640_s11, %s896_s11   ;;  %s603_s10 = sphi %s638_s10, %s895_s10   ;;  %s599_s9 = sphi %s636_s9, %s894_s9  }
   0x8   : > { %s661_s15 = sadd.s32 1, %s611_s12   ;;  %s28_s16 = sadd.s32 1, %s607_s11 }
   0x9   : > { %s25_s17 = ssub.s32 %s611_s12, %s661_s15  ;;  %p35_p0 = scmp.ne.s32.totalorder %s607_s11, %s603_s10 }
   0xa   : > { %p26_p1 = scmp.eq.s32.totalorder %s25_s17, 0  ;;  %p36_p2 = scmp.eq.s32.totalorder %s611_s12, 0 }
   0xb   : > { %p41_p3 = scmp.ne.s32.totalorder %s603_s10, %s599_s9  ;;  %p42_p4 = scmp.eq.s32.totalorder %s657_s13, 0 }
   0xc   : > { %s673_s18 = scalar_select %p26_p1, %s607_s11, %s28_s16  }
   0xd   : > { %p675_p5 = por %p36_p2, %p35_p0  ;;  %p679_p6 = por %p42_p4, %p41_p3 }
   0xe   : > { %p91_p7 = scmp.eq.s32.totalorder %s657_s13, 1  ;;  %p97_p8 = scmp.eq.s32.totalorder %s394_s14, 1 }
   0xf   : > { %s885_s20 = scalar_select %p679_p6, 1, 0 }
  0x10   : > { %p432_p10 = scmp.lt.s32.totalorder %s611_s12, 2  ;;  %p686_p11 = por %p91_p7, %p35_p0 }
  0x11   : > { %p690_p12 = por %p97_p8, %p41_p3  ;;  %s695_s23 = sand.u32 1, %s607_s11  }
  0x12   : > { %s886_s21 = scalar_select %p686_p11, 1, 0 }
  0x13   : > { %s887_s22 = scalar_select %p690_p12, 1, 0 }
  0x14   : > { %s411_s24 = sshll.u32 %s611_s12, 8  ;;  %s397_s25 = sshll.u32 %s695_s23, 4 }
  0x15   : > { %s704_s28 = scalar_lea.hbm %s879_s0, %s411_s24  ;;  %s121_s29 = scalar_lea.vmem [#allocation2], %s397_s25 }
  0x16   : > { %s128_s30 = sshll.u32 %s121_s29, 4  ;;  %p710_p13 = pnand %p432_p10, %p675_p5  ;;  %s714_s30 = int_to_ptr.vmem [resolvable:$true] %s128_s30 }
  0x17   : > { %s118_s4 = scalar_lea.sflag [#allocation3], %s695_s23  ;;  %s487_s5 = scalar_lea.hbm %s704_s28, 256 }
  0x18   : > { %p488_p0 = scmp.ne.s32.totalorder %s704_s28, %s487_s5  ;;  %p489_p1 = pneg %p710_p13 }
  0x19   : > { %s492_s8 = scalar_lea.hbm %s879_s0, 512  ;;  %p493_p4 = scmp.lt.s32.totalorder %s704_s28, %s879_s0 }
  0x1a   : > { %p490_p2 = pnand %p489_p1, %p488_p0  ;;  %p494_p5 = scmp.lt.s32.totalorder %s492_s8, %s487_s5 }
  0x1c   : > { %p491_p3 = pneg %p490_p2  ;;  %p495_p7 = por %p494_p5, %p493_p4 }
  0x1e   : > { %p496_p8 = pnand %p495_p7, %p491_p3 }
  0x20   : > { %499 = shalt.err (!%p496_p8)
}
  0x21   : > { %s500_s17 = scalar_lea.vmem %s714_s30, 256  ;;  %s613_s19 = smov [#allocation2]  }
  0x22   : > { %p501_p10 = scmp.ne.s32.totalorder %s714_s30, %s500_s17  ;;  %s505_s26 = sshll.u32 %s613_s19, 4  ;;  %s506_s26 = int_to_ptr.vmem [resolvable:$false] %s505_s26 }
  0x23   : > { %s507_s27 = scalar_lea.vmem %s506_s26, 512  ;;  %p508_p9 = scmp.lt.s32.totalorder %s714_s30, %s506_s26 }
  0x24   : > { %p503_p0 = pnand %p501_p10, %p489_p1  ;;  %p509_p12 = scmp.lt.s32.totalorder %s507_s27, %s500_s17 }
  0x26   : > { %p504_p2 = pneg %p503_p0  ;;  %p510_p11 = por %p509_p12, %p508_p9 }
  0x28   : > { %p511_p4 = pnand %p510_p11, %p504_p2 }
  0x2a   : > { %514 = shalt.err (!%p511_p4)
}
  0x2b   : > { %s614_s29 = smov 128   ;;  %s615_s5 = smov 8  }
  0x2c   : > { %424 = dma.hbm_to_vmem [thread:$0]  (!%p710_p13), %s704_s28, 256, %s714_s30, %s118_s4, %s614_s29, %s614_s29, %s615_s5  }
  0x2d   : > { %p403_p9 = scmp.ge.s32.totalorder %s611_s12, 1  ;;  %p157_p11 = scmp.lt.s32.totalorder %s611_s12, 3 }
  0x2e   : > { %s757_s14 = scalar_lea.hbm %s880_s1, %s411_s24  ;;  %s142_s16 = scalar_lea.vmem [#allocation5], %s397_s25 }
  0x2f   : > { %p748_p12 = pnand %p403_p9, %p157_p11  ;;  %s149_s17 = sshll.u32 %s142_s16, 4  ;;  %s761_s17 = int_to_ptr.vmem [resolvable:$true] %s149_s17 }
  0x30   : > { %s139_s28 = scalar_lea.sflag [#allocation6], %s695_s23  ;;  %s515_s30 = scalar_lea.hbm %s757_s14, 256 }
  0x31   : > { %p516_p3 = scmp.ne.s32.totalorder %s757_s14, %s515_s30  ;;  %s520_s24 = scalar_lea.hbm %s880_s1, 512 }
  0x32   : > { %p521_p8 = scmp.lt.s32.totalorder %s757_s14, %s880_s1  ;;  %p522_p10 = scmp.lt.s32.totalorder %s520_s24, %s515_s30 }
  0x33   : > { %p518_p5 = pnand %p516_p3, %p489_p1 }
  0x34   : > { %p523_p0 = por %p522_p10, %p521_p8 }
  0x35   : > { %p519_p7 = pneg %p518_p5 }
  0x37   : > { %p524_p2 = pnand %p523_p0, %p519_p7 }
  0x39   : > { %527 = shalt.err (!%p524_p2)
}
  0x3a   : > { %s528_s23 = scalar_lea.vmem %s761_s17, 256  ;;  %s616_s25 = smov [#allocation5]  }
  0x3b   : > { %p529_p4 = scmp.ne.s32.totalorder %s761_s17, %s528_s23  ;;  %s533_s7 = sshll.u32 %s616_s25, 4  ;;  %s534_s7 = int_to_ptr.vmem [resolvable:$false] %s533_s7 }
  0x3c   : > { %s535_s8 = scalar_lea.vmem %s534_s7, 512  ;;  %p536_p3 = scmp.lt.s32.totalorder %s761_s17, %s534_s7 }
  0x3d   : > { %p531_p9 = pnand %p529_p4, %p489_p1  ;;  %p537_p5 = scmp.lt.s32.totalorder %s535_s8, %s528_s23 }
  0x3f   : > { %p532_p11 = pneg %p531_p9  ;;  %p538_p6 = por %p537_p5, %p536_p3 }
  0x41   : > { %p539_p8 = pnand %p538_p6, %p532_p11 }
  0x43   : > { %542 = shalt.err (!%p539_p8)
}
  0x44   : > { %427 = dma.hbm_to_vmem [thread:$0]  (!%p710_p13), %s757_s14, 256, %s761_s17, %s139_s28, %s614_s29, %s614_s29, %s615_s5  }
  0x45   : > { %161 = sbr.rel (%p748_p12) target bundleno = 164 (0xa4), region = 28  ;;  %s792_s16 = sand.u32 (!%p748_p12), 1, %s603_s10  }
  0x46   : > { %s404_s30 = sshll.u32 (!%p748_p12), %s792_s16, 4  ;;  %s164_s4 = scalar_lea.sflag (!%p748_p12), [#allocation3], %s792_s16 }
  0x47   : > { %s167_s19 = scalar_lea.vmem (!%p748_p12), [#allocation2], %s404_s30  ;;  %p890_p6 = scmp.ne.s32.totalorder (!%p748_p12), %s885_s20, 0 }
  0x4a   : > { %586 = dma.done.wait (%p890_p6), %s164_s4, 256  }
  0x4b   : > { %588 = vsyncadd (%p890_p6), %s164_s4, 4294967040  ;;  %s173_s3 = scalar_lea.sflag [#allocation6], %s792_s16  ;;  %s176_s29 = scalar_lea.vmem [#allocation5], %s404_s30 }
  0x4c   : > { %590 = dma.done.wait (%p890_p6), %s173_s3, 256  }
  0x4d   : > { %592 = vsyncadd (%p890_p6), %s173_s3, 4294967040  ;;  %s413_s5 = smul.u32 24, %s792_s16  ;;  %v204_v0 = vld [vmem:[%s167_s19] sm:$0xff]  ;;  %v205_v1 = vld [vmem:[%s167_s19 + $0x8] sm:$0xff]  ;;  %v617_v8 = vmov 0.0   ;;  %s285_s24 = scalar_lea.sflag [#allocation4], %s792_s16 }
  0x4e   : > { %v806_v2 = vld [vmem:[%s176_s29] sm:$0xff]  ;;  %v808_v3 = vld [vmem:[%s176_s29 + $0x8] sm:$0xff]  ;;  %v208_v4 = vand.u32 2147483647, %v204_v0  ;;  %v209_v5 = vand.u32 2147483647, %v205_v1 }
  0x4f   : > { %vm250_vm0 = vcmp.eq.f32.partialorder %v806_v2, 1.0  ;;  %vm251_vm1 = vcmp.eq.f32.partialorder %v808_v3, 1.0  ;;  %s816_s20 = scalar_lea.vmem [#allocation7], %s413_s5  ;;  %v216_v18 = vsub.f32 0.0, %v204_v0  ;;  %v217_v19 = vsub.f32 0.0, %v205_v1  ;;  %s414_s6 = smul.u32 384, %s657_s13 }
  0x50   : > { %v210_v6 = vsub.f32 0.0, %v208_v4  ;;  %v211_v7 = vsub.f32 0.0, %v209_v5  ;;  %v274_v9 = vsel %vm250_vm0, 1.0, %v617_v8  ;;  %v275_v12 = vsel %vm251_vm1, 1.0, %v617_v8  ;;  %s298_s14 = sshll.u32 %s816_s20, 4  ;;  %p891_p1 = scmp.ne.s32.totalorder %s886_s21, 0  ;;  %s829_s14 = int_to_ptr.vmem [resolvable:$true] %s298_s14 }
  0x51   : > { %v281_v13 = vadd.f32 %v275_v12, %v274_v9  ;;  %v218_v20 = vmax.f32 %v216_v18, 0.0  ;;  %v219_v22 = vmax.f32 %v217_v19, 0.0  ;;  %v254_v46 = vsub.f32 1.0, %v806_v2  ;;  %s834_s28 = scalar_lea.hbm %s881_s2, %s414_s6  ;;  %s543_s26 = scalar_lea.vmem %s829_s14, 384 }
  0x52   : > { %v212_v10 = vmul.f32 1.442695, %v210_v6  ;;  %v214_v11 = vmul.f32 1.442695, %v211_v7  ;;  %v255_v47 = vsub.f32 1.0, %v808_v3  ;;  %vm252_vm2 = vcmp.lt.f32.partialorder %v806_v2, 1.0  ;;  %p544_p13 = scmp.ne.s32.totalorder %s829_s14, %s543_s26 }
  0x53   : > { %407 = vst [vmem:[%s816_s20 + $0x10] sm:$0xff] %v281_v13  ;;  %v256_v48 = vmul.f32 %v254_v46, %v254_v46  ;;  %vm253_vm3 = vcmp.lt.f32.partialorder %v808_v3, 1.0  ;;  %s618_s27 = smov [#allocation7]  }
  0x54   : > { %471 = vpow2.f32 %v212_v10  ;;  %v257_v49 = vmul.f32 %v255_v47, %v255_v47  ;;  %p545_p12 = pnand %p544_p13, %p891_p1  ;;  %s547_s23 = sshll.u32 %s618_s27, 4  ;;  %s548_s23 = int_to_ptr.vmem [resolvable:$false] %s547_s23 }
  0x55   : > { %473 = vpow2.f32 %v214_v11  ;;  %v258_v52 = vmul.f32 %v256_v48, %v256_v48  ;;  %s549_s25 = scalar_lea.vmem %s548_s23, 768  ;;  %p550_p10 = scmp.lt.s32.totalorder %s829_s14, %s548_s23 }
  0x56   : > { %v259_v55 = vmul.f32 %v257_v49, %v257_v49  ;;  %p546_p7 = pneg %p545_p12  ;;  %p551_p0 = scmp.lt.s32.totalorder %s549_s25, %s543_s26 }
  0x58   : > { %p552_p2 = por %p551_p0, %p550_p10 }
  0x5a   : > { %p553_p4 = pnand %p552_p2, %p546_p7 }
  0x61   : > { %v472_v14 = vpop.eup %471 }
  0x62   : > { %v474_v15 = vpop.eup %473  ;;  %v220_v16 = vadd.f32 1.0, %v472_v14 }
  0x63   : > { %v221_v17 = vadd.f32 1.0, %v474_v15 }
  0x64   : > { %475 = vlog2.f32 %v220_v16 }
  0x65   : > { %477 = vlog2.f32 %v221_v17 }
  0x71   : > { %v476_v21 = vpop.eup %475 }
  0x72   : > { %v478_v23 = vpop.eup %477  ;;  %v223_v24 = vmul.f32 0.6931472, %v476_v21 }
  0x73   : > { %v225_v25 = vmul.f32 0.6931472, %v478_v23 }
  0x74   : > { %v226_v26 = vadd.f32 %v223_v24, %v218_v20 }
  0x75   : > { %v227_v27 = vadd.f32 %v225_v25, %v219_v22 }
  0x76   : > { %v228_v28 = vsub.f32 0.0, %v226_v26  ;;  %v234_v29 = vadd.f32 %v226_v26, %v204_v0 }
  0x77   : > { %v229_v30 = vsub.f32 0.0, %v227_v27  ;;  %v235_v31 = vadd.f32 %v227_v27, %v205_v1 }
  0x78   : > { %v230_v32 = vmax.f32 %v228_v28, -9.2103405  ;;  %v236_v33 = vsub.f32 0.0, %v234_v29 }
  0x79   : > { %v231_v34 = vmax.f32 %v229_v30, -9.2103405  ;;  %v237_v35 = vsub.f32 0.0, %v235_v31 }
  0x7a   : > { %v232_v36 = vmin.f32 %v230_v32, -0.000100005  ;;  %v238_v37 = vmax.f32 %v236_v33, -9.2103405 }
  0x7b   : > { %v233_v38 = vmin.f32 %v231_v34, -0.000100005  ;;  %v239_v39 = vmax.f32 %v237_v35, -9.2103405 }
  0x7c   : > { %v240_v40 = vmin.f32 %v238_v37, -0.000100005  ;;  %v242_v41 = vmul.f32 1.442695, %v232_v36 }
  0x7d   : > { %v241_v42 = vmin.f32 %v239_v39, -0.000100005  ;;  %v244_v43 = vmul.f32 1.442695, %v233_v38 }
  0x7e   : > { %479 = vpow2.f32 %v242_v41  ;;  %v246_v44 = vmul.f32 1.442695, %v240_v40 }
  0x7f   : > { %481 = vpow2.f32 %v244_v43  ;;  %v248_v45 = vmul.f32 1.442695, %v241_v42 }
  0x80   : > { %483 = vpow2.f32 %v246_v44 }
  0x81   : > { %485 = vpow2.f32 %v248_v45 }
  0x8b   : > { %v480_v50 = vpop.eup %479 }
  0x8c   : > { %v482_v51 = vpop.eup %481  ;;  %v266_v53 = vmul.f32 %v480_v50, %v240_v40 }
  0x8d   : > { %v484_v54 = vpop.eup %483  ;;  %v267_v56 = vmul.f32 %v482_v51, %v241_v42 }
  0x8e   : > { %v486_v57 = vpop.eup %485  ;;  %v260_v58 = vmul.f32 %v484_v54, %v232_v36  ;;  %v268_v59 = vmul.f32 %v480_v50, %v266_v53 }
  0x8f   : > { %v261_v60 = vmul.f32 %v486_v57, %v233_v38  ;;  %v269_v61 = vmul.f32 %v482_v51, %v267_v56 }
  0x90   : > { %v262_v62 = vmul.f32 %v484_v54, %v260_v58  ;;  %v270_v63 = vmul.f32 %v268_v59, %v258_v52 }
  0x91   : > { %v263_v0 = vmul.f32 %v486_v57, %v261_v60  ;;  %v271_v1 = vmul.f32 %v269_v61, %v259_v55 }
  0x92   : > { %v264_v4 = vsel %vm250_vm0, %v262_v62, 0.0  ;;  %v272_v5 = vsel %vm252_vm2, %v270_v63, 0.0 }
  0x93   : > { %v265_v6 = vsel %vm251_vm1, %v263_v0, 0.0  ;;  %v273_v7 = vsel %vm253_vm3, %v271_v1, 0.0 }
  0x94   : > { %v276_v8 = vadd.f32 %v265_v6, %v264_v4  ;;  %v278_v9 = vadd.f32 %v273_v7, %v272_v5 }
  0x96   : > { %277 = vst [vmem:[%s816_s20] sm:$0xff] %v276_v8  ;;  %406 = vst [vmem:[%s816_s20 + $0x8] sm:$0xff] %v278_v9 }
  0x97   : > { %556 = shalt.err (!%p553_p4)
}
  0x98   : > { %s557_s7 = scalar_lea.hbm %s834_s28, 384  ;;  %s561_s4 = scalar_lea.hbm %s881_s2, 768 }
  0x99   : > { %p558_p9 = scmp.ne.s32.totalorder %s834_s28, %s557_s7  ;;  %p562_p5 = scmp.lt.s32.totalorder %s834_s28, %s881_s2 }
  0x9a   : > { %p563_p8 = scmp.lt.s32.totalorder %s561_s4, %s557_s7 }
  0x9b   : > { %p559_p11 = pnand %p558_p9, %p891_p1 }
  0x9c   : > { %p564_p6 = por %p563_p8, %p562_p5 }
  0x9d   : > { %p560_p3 = pneg %p559_p11 }
  0x9f   : > { %p565_p13 = pnand %p564_p6, %p560_p3 }
  0xa1   : > { %568 = shalt.err (!%p565_p13)
}
  0xa2   : > { %s619_s29 = smov 128   ;;  %s620_s5 = smov 8  }
  0xa3   : > { %419 = dma.vmem_to_hbm [thread:$0]  (%p891_p1), %s829_s14, 384, %s834_s28, %s285_s24, %s619_s29, %s619_s29, %s620_s5  }
  0xa4 PF: > { %s313_s20 = sand.u32 1, %s599_s9   ;;  %p892_p12 = scmp.ne.s32.totalorder %s887_s22, 0 }
  0xa5   : > { %p893_p7 = scmp.ge.s32.totalorder %s611_s12, 2  ;;  %s314_s6 = scalar_lea.sflag [#allocation4], %s313_s20 }
  0xa7   : > { %p429_p10 = pnand %p893_p7, %p892_p12 }
  0xa9   : > { %p430_p0 = pneg %p429_p10 }
  0xab   : > { %594 = dma.done.wait (%p430_p0), %s314_s6, 384  }
  0xac   : > { %596 = vsyncadd (%p430_p0), %s314_s6, 4294966912  ;;  %p18_p2 = scmp.ge.s32.totalorder %s661_s15, 4   ;;  %s894_s9 = smov %s603_s10 }
  0xad   : > { %s895_s10 = smov %s607_s11  ;;  %s896_s11 = smov %s673_s18 }
  0xae   : > { %s897_s12 = smov %s661_s15  ;;  %20 = sbr.rel (!%p18_p2) target bundleno = 7 (0x7), region = 88 }
  0xb3   :  { %319 = vsyncpa [#allocation3], 1 }
  0xb4   :  { %321 = vsyncpa [#allocation3 + $0x1], 1 }
  0xb5   :  { %322 = vsyncpa [#allocation6], 1 }
  0xb6   :  { %324 = vsyncpa [#allocation6 + $0x1], 1 }
  0xb7   :  { %325 = vsyncpa [#allocation4], 1 }
  0xb8   :  { %327 = vsyncpa [#allocation4 + $0x1], 1 }

</bundles_post_ra>
